<compile_context>
chip_gen: v5e
topology: v5e:2x2
jax: 0.10.0
libtpu: 0.0.40
codegen_flags: <defaults>
</compile_context>

<pallas_src>
import functools

import jax
import jax.numpy as jnp
from jax.experimental import pallas as pl
from jax.experimental.pallas import tpu as pltpu

_LANE = 128
_SUBLANE = 8


def _round_up(x, m):
    return ((x + m - 1) // m) * m


def _mlp_policy_kernel(n_layers, *refs):
    """One batch tile of the fused mean_net forward.

    refs layout:
      [x_ref,                                    # (TB, ob_dim) bf16
       W_0, b_0, ..., W_{n_layers}, b_{n_layers},# W: bf16 (in_pad, out_pad), b: f32 (1, out_pad)
       mean_ref]                                 # (TB, ac_pad) f32
    """
    num_linear = n_layers + 1
    x_ref = refs[0]
    wb_refs = refs[1:1 + 2 * num_linear]
    mean_ref = refs[1 + 2 * num_linear]

    h = x_ref[...]  # bf16
    # hidden layers: Linear -> tanh (f32 accumulate, f32 tanh on EUP, bf16 back to MXU)
    for li in range(n_layers):
        w = wb_refs[2 * li][...]
        b = wb_refs[2 * li + 1][...]
        acc = jnp.dot(h, w, preferred_element_type=jnp.float32) + b
        h = jnp.tanh(acc).astype(jnp.bfloat16)
    # output layer: Linear with identity output activation
    w_out = wb_refs[2 * n_layers][...]
    b_out = wb_refs[2 * n_layers + 1][...]
    mean_ref[...] = jnp.dot(h, w_out, preferred_element_type=jnp.float32) + b_out


def mlp_policy_forward(observation, weights, biases, logstd, *, batch_tile=1024):
    """Pallas-backed equivalent of MLPPolicy.forward (continuous branch).

    observation: (B, ob_dim) float32
    weights:     list of (in, out) float32 arrays, len == n_layers + 1
    biases:      list of (out,)    float32 arrays, len == n_layers + 1
    logstd:      (ac_dim,) float32

    Returns (mean, std) with mean: (B, ac_dim) f32, std: (ac_dim,) f32.
    """
    n_layers = len(weights) - 1
    B, ob_dim = observation.shape
    ac_dim = weights[-1].shape[1]

    # ---- lane-dense zero-padding of feature dims (sliced off at the end) ----
    padded_w, padded_b = [], []
    prev_pad = ob_dim  # keep the input feature dim unpadded: minimizes streamed HBM bytes
    for w, b in zip(weights, biases):
        fin, fout = w.shape
        fout_pad = _round_up(fout, _LANE)
        wp = jnp.zeros((prev_pad, fout_pad), jnp.float32).at[:fin, :fout].set(
            w.astype(jnp.float32))
        bp = jnp.zeros((1, fout_pad), jnp.float32).at[:, :fout].set(
            b.reshape(1, -1).astype(jnp.float32))
        padded_w.append(wp.astype(jnp.bfloat16))  # MXU input dtype
        padded_b.append(bp)                        # bias stays f32
        prev_pad = fout_pad
    ac_pad = padded_w[-1].shape[1]

    # ---- batch tiling: pad B up to a multiple of the tile size -------------
    tb = _round_up(min(batch_tile, _round_up(B, _SUBLANE)), _SUBLANE)
    b_pad = _round_up(B, tb)
    obs = observation.astype(jnp.float32)
    if b_pad != B:
        obs = jnp.zeros((b_pad, ob_dim), jnp.float32).at[:B].set(obs)
    obs = obs.astype(jnp.bfloat16)
    grid = (b_pad // tb,)

    # ---- specs: obs/mean tiled over batch, params resident across all tiles -
    args = [obs]
    in_specs = [pl.BlockSpec((tb, ob_dim), lambda i: (i, 0))]
    for wp, bp in zip(padded_w, padded_b):
        args += [wp, bp]
        in_specs += [
            pl.BlockSpec(wp.shape, lambda i: (0, 0)),
            pl.BlockSpec(bp.shape, lambda i: (0, 0)),
        ]
    out_shape = jax.ShapeDtypeStruct((b_pad, ac_pad), jnp.float32)
    out_spec = pl.BlockSpec((tb, ac_pad), lambda i: (i, 0))

    kernel = functools.partial(_mlp_policy_kernel, n_layers)
    mean_padded = pl.pallas_call(
        kernel,
        out_shape=out_shape,
        grid=grid,
        in_specs=in_specs,
        out_specs=out_spec,
        compiler_params=pltpu.CompilerParams(
            dimension_semantics=("parallel",)),
    )(*args)

    mean = mean_padded[:B, :ac_dim]
    # std = exp(logstd) is batch-independent: compute once in the wrapper (no per-tile work).
    std = jnp.exp(logstd.astype(jnp.float32))
    return mean, std


def init_mlp_policy_params(key, ob_dim, ac_dim, n_layers, size):
    """Deterministic synthetic init for mean_net + logstd (logstd = zeros, as in __init__)."""
    dims = [ob_dim] + [size] * n_layers + [ac_dim]
    weights, biases = [], []
    for li in range(len(dims) - 1):
        key, wk, bk = jax.random.split(key, 3)
        fan_in = dims[li]
        bound = 1.0 / jnp.sqrt(jnp.float32(fan_in))
        weights.append(
            jax.random.uniform(wk, (dims[li], dims[li + 1]), jnp.float32, -bound, bound)
        )
        biases.append(
            jax.random.uniform(bk, (dims[li + 1],), jnp.float32, -bound, bound)
        )
    logstd = jnp.zeros((ac_dim,), jnp.float32)  # nn.Parameter(torch.zeros(ac_dim))
    return weights, biases, logstd


def _reference_forward(observation, weights, biases, logstd):
    """Pure-JAX reference mirroring the kernel's bf16-matmul / f32-accumulate semantics."""
    h = observation.astype(jnp.float32)
    for li in range(len(weights) - 1):
        z = jnp.dot(h.astype(jnp.bfloat16), weights[li].astype(jnp.bfloat16),
                    preferred_element_type=jnp.float32) + biases[li]
        h = jnp.tanh(z)
    mean = jnp.dot(h.astype(jnp.bfloat16), weights[-1].astype(jnp.bfloat16),
                   preferred_element_type=jnp.float32) + biases[-1]
    return mean, jnp.exp(logstd)


if __name__ == "__main__":
    # Small shapes consistent with the module: continuous policy.
    B, ob_dim, ac_dim, n_layers, size = 2, 4, 2, 2, 32

    key = jax.random.PRNGKey(0)
    key, obs_key = jax.random.split(key)
    obs = jax.random.normal(obs_key, (B, ob_dim), jnp.float32)

    weights, biases, logstd = init_mlp_policy_params(key, ob_dim, ac_dim, n_layers, size)

    # Single-tile case (B=2 pads to one 8-row tile).
    mean, std = mlp_policy_forward(obs, weights, biases, logstd)
    jax.block_until_ready((mean, std))

    mean_ref, std_ref = _reference_forward(obs, weights, biases, logstd)
    assert mean.shape == (B, ac_dim) and std.shape == (ac_dim,)
    assert jnp.allclose(mean, mean_ref, atol=2e-3, rtol=2e-3), "mean mismatch (small batch)"
    assert jnp.allclose(std, std_ref, atol=1e-6), "std mismatch"

    # Multi-tile case: exercises the batch grid, ragged-batch padding, and resident weights.
    key, obs_key2 = jax.random.split(key)
    B2 = 300
    obs2 = jax.random.normal(obs_key2, (B2, ob_dim), jnp.float32)
    mean2, std2 = mlp_policy_forward(obs2, weights, biases, logstd, batch_tile=128)
    jax.block_until_ready((mean2, std2))
    mean2_ref, _ = _reference_forward(obs2, weights, biases, logstd)
    assert mean2.shape == (B2, ac_dim)
    assert jnp.allclose(mean2, mean2_ref, atol=2e-3, rtol=2e-3), "mean mismatch (tiled batch)"

    # TODO(synk): discrete branch (logits_na) and get_action sampling are host-side
    # distribution logic, not part of the forward hot path; not implemented here.
    print("KERNEL_OK")
</pallas_src>

<mosaic_0001>
module attributes {stable_mosaic.version = 11 : i64} {
  func.func @_mlp_policy_kernel(%arg0: i32, %arg1: memref<8x4xbf16, #tpu.memory_space<vmem>>, %arg2: memref<4x128xbf16, #tpu.memory_space<vmem>>, %arg3: memref<1x128xf32, #tpu.memory_space<vmem>>, %arg4: memref<128x128xbf16, #tpu.memory_space<vmem>>, %arg5: memref<1x128xf32, #tpu.memory_space<vmem>>, %arg6: memref<128x128xbf16, #tpu.memory_space<vmem>>, %arg7: memref<1x128xf32, #tpu.memory_space<vmem>>, %arg8: memref<8x128xf32, #tpu.memory_space<vmem>>) attributes {dimension_semantics = [#tpu.dimension_semantics<parallel>], iteration_bounds = array<i64: 1>, scalar_prefetch = 0 : i64, scratch_operands = 0 : i64, tpu.core_type = #tpu.core_type<tc>, window_params = [{transform_indices = @transform_0, window_bounds = array<i64: 8, 4>}, {pipeline_mode = #tpu.pipeline_mode<synchronous>, transform_indices = @transform_1, window_bounds = array<i64: 4, 128>}, {pipeline_mode = #tpu.pipeline_mode<synchronous>, transform_indices = @transform_2, window_bounds = array<i64: 1, 128>}, {pipeline_mode = #tpu.pipeline_mode<synchronous>, transform_indices = @transform_3, window_bounds = array<i64: 128, 128>}, {pipeline_mode = #tpu.pipeline_mode<synchronous>, transform_indices = @transform_4, window_bounds = array<i64: 1, 128>}, {pipeline_mode = #tpu.pipeline_mode<synchronous>, transform_indices = @transform_5, window_bounds = array<i64: 128, 128>}, {pipeline_mode = #tpu.pipeline_mode<synchronous>, transform_indices = @transform_6, window_bounds = array<i64: 1, 128>}, {transform_indices = @transform_7, window_bounds = array<i64: 8, 128>}]} {
    %c0 = arith.constant 0 : index
    %c0_0 = arith.constant 0 : index
    %0 = vector.load %arg1[%c0, %c0_0] : memref<8x4xbf16, #tpu.memory_space<vmem>>, vector<8x4xbf16>
    %c0_1 = arith.constant 0 : index
    %c0_2 = arith.constant 0 : index
    %1 = vector.load %arg2[%c0_1, %c0_2] : memref<4x128xbf16, #tpu.memory_space<vmem>>, vector<4x128xbf16>
    %c0_3 = arith.constant 0 : index
    %c0_4 = arith.constant 0 : index
    %2 = vector.load %arg3[%c0_3, %c0_4] : memref<1x128xf32, #tpu.memory_space<vmem>>, vector<1x128xf32>
    %cst = arith.constant dense<0.000000e+00> : vector<8x128xf32>
    %3 = tpu.matmul %0, %1, %cst {dimension_numbers = #tpu.dot_dimension_numbers<[1], [0], [0], [1], [0, 0, 1, 1], [], []>} : vector<8x4xbf16>, vector<4x128xbf16>, vector<8x128xf32> -> vector<8x128xf32>
    %4 = vector.broadcast %2 : vector<1x128xf32> to vector<8x128xf32>
    %5 = arith.addf %3, %4 : vector<8x128xf32>
    %6 = math.tanh %5 : vector<8x128xf32>
    %7 = arith.truncf %6 : vector<8x128xf32> to vector<8x128xbf16>
    %c0_5 = arith.constant 0 : index
    %c0_6 = arith.constant 0 : index
    %8 = vector.load %arg4[%c0_5, %c0_6] : memref<128x128xbf16, #tpu.memory_space<vmem>>, vector<128x128xbf16>
    %c0_7 = arith.constant 0 : index
    %c0_8 = arith.constant 0 : index
    %9 = vector.load %arg5[%c0_7, %c0_8] : memref<1x128xf32, #tpu.memory_space<vmem>>, vector<1x128xf32>
    %cst_9 = arith.constant dense<0.000000e+00> : vector<8x128xf32>
    %10 = tpu.matmul %7, %8, %cst_9 {dimension_numbers = #tpu.dot_dimension_numbers<[1], [0], [0], [1], [0, 0, 1, 1], [], []>} : vector<8x128xbf16>, vector<128x128xbf16>, vector<8x128xf32> -> vector<8x128xf32>
    %11 = vector.broadcast %9 : vector<1x128xf32> to vector<8x128xf32>
    %12 = arith.addf %10, %11 : vector<8x128xf32>
    %13 = math.tanh %12 : vector<8x128xf32>
    %14 = arith.truncf %13 : vector<8x128xf32> to vector<8x128xbf16>
    %c0_10 = arith.constant 0 : index
    %c0_11 = arith.constant 0 : index
    %15 = vector.load %arg6[%c0_10, %c0_11] : memref<128x128xbf16, #tpu.memory_space<vmem>>, vector<128x128xbf16>
    %c0_12 = arith.constant 0 : index
    %c0_13 = arith.constant 0 : index
    %16 = vector.load %arg7[%c0_12, %c0_13] : memref<1x128xf32, #tpu.memory_space<vmem>>, vector<1x128xf32>
    %cst_14 = arith.constant dense<0.000000e+00> : vector<8x128xf32>
    %17 = tpu.matmul %14, %15, %cst_14 {dimension_numbers = #tpu.dot_dimension_numbers<[1], [0], [0], [1], [0, 0, 1, 1], [], []>} : vector<8x128xbf16>, vector<128x128xbf16>, vector<8x128xf32> -> vector<8x128xf32>
    %18 = vector.broadcast %16 : vector<1x128xf32> to vector<8x128xf32>
    %19 = arith.addf %17, %18 : vector<8x128xf32>
    %c0_15 = arith.constant 0 : index
    %c0_16 = arith.constant 0 : index
    %20 = vector.load %arg8[%c0_15, %c0_16] : memref<8x128xf32, #tpu.memory_space<vmem>>, vector<8x128xf32>
    tpu.vector_store %arg8[%c0_15, %c0_16], %19 {strides = array<i32>} : memref<8x128xf32, #tpu.memory_space<vmem>>, vector<8x128xf32>,
    return
  }
  func.func @transform_0(%arg0: i32) -> (i32, i32) {
    %c0_i32 = arith.constant 0 : i32
    %c0_i32_0 = arith.constant 0 : i32
    return %arg0, %c0_i32 : i32, i32
  }
  func.func @transform_1(%arg0: i32) -> (i32, i32) {
    %c0_i32 = arith.constant 0 : i32
    %c0_i32_0 = arith.constant 0 : i32
    %c0_i32_1 = arith.constant 0 : i32
    return %c0_i32, %c0_i32_0 : i32, i32
  }
  func.func @transform_2(%arg0: i32) -> (i32, i32) {
    %c0_i32 = arith.constant 0 : i32
    %c0_i32_0 = arith.constant 0 : i32
    %c0_i32_1 = arith.constant 0 : i32
    return %c0_i32, %c0_i32_0 : i32, i32
  }
  func.func @transform_3(%arg0: i32) -> (i32, i32) {
    %c0_i32 = arith.constant 0 : i32
    %c0_i32_0 = arith.constant 0 : i32
    %c0_i32_1 = arith.constant 0 : i32
    return %c0_i32, %c0_i32_0 : i32, i32
  }
  func.func @transform_4(%arg0: i32) -> (i32, i32) {
    %c0_i32 = arith.constant 0 : i32
    %c0_i32_0 = arith.constant 0 : i32
    %c0_i32_1 = arith.constant 0 : i32
    return %c0_i32, %c0_i32_0 : i32, i32
  }
  func.func @transform_5(%arg0: i32) -> (i32, i32) {
    %c0_i32 = arith.constant 0 : i32
    %c0_i32_0 = arith.constant 0 : i32
    %c0_i32_1 = arith.constant 0 : i32
    return %c0_i32, %c0_i32_0 : i32, i32
  }
  func.func @transform_6(%arg0: i32) -> (i32, i32) {
    %c0_i32 = arith.constant 0 : i32
    %c0_i32_0 = arith.constant 0 : i32
    %c0_i32_1 = arith.constant 0 : i32
    return %c0_i32, %c0_i32_0 : i32, i32
  }
  func.func @transform_7(%arg0: i32) -> (i32, i32) {
    %c0_i32 = arith.constant 0 : i32
    %c0_i32_0 = arith.constant 0 : i32
    return %arg0, %c0_i32 : i32, i32
  }
}

</mosaic_0001>

<bundles_post_ra>
// kernel: tpu_custom_call.1
= control target key start
LH: loop header
LB: loop body
LE: loop exit
PB: predicated region body
PF: predicated region fallthrough
CT: control target
= control target key end

     0   :  { %12 = vsyncpa [#allocation3], 0  ;;  %s512_s0 = inlined_call_operand.vmem [shape: bf16[8,4], index: 0, kind: input, shape index: {}]   ;;  %s513_s1 = inlined_call_operand.vmem [shape: bf16[4,128], index: 1, kind: input, shape index: {}]   ;;  %s514_s2 = inlined_call_operand.vmem [shape: f32[1,128], index: 2, kind: input, shape index: {}]   ;;  %s515_s3 = inlined_call_operand.hbm [shape: bf16[128,128], index: 3, kind: input, shape index: {}]   ;;  %s516_s4 = inlined_call_operand.vmem [shape: f32[1,128], index: 4, kind: input, shape index: {}]   ;;  %s517_s5 = inlined_call_operand.hbm [shape: bf16[128,128], index: 5, kind: input, shape index: {}]   ;;  %s518_s6 = inlined_call_operand.vmem [shape: f32[1,128], index: 6, kind: input, shape index: {}]   ;;  %s519_s7 = inlined_call_operand.hbm [shape: f32[8,128], index: 7, kind: output, shape index: {}]  }
   0x1   :  { %13 = vsyncpa [#allocation6], 0 }
   0x2   :  { %14 = vsyncpa [#allocation4], 0  ;;  %s25_s26 = sshll.u32 %s515_s3, 4  ;;  %s443_s27 = smov [#allocation2]   ;;  %s26_s26 = int_to_ptr.hbm [resolvable:$true] %s25_s26 }
   0x3   :  { %s27_s28 = sshll.u32 %s443_s27, 4  ;;  %s40_s8 = sshll.u32 %s517_s5, 4  ;;  %s28_s28 = int_to_ptr.vmem [resolvable:$true] %s27_s28  ;;  %s41_s8 = int_to_ptr.hbm [resolvable:$true] %s40_s8 }
   0x4   :  { %s444_s9 = smov 64   ;;  %s445_s10 = smov 4  }
   0x5   :  { %33 = dma.hbm_to_vmem [thread:$0]  %s26_s26, 1024, %s28_s28, [#allocation3], %s444_s9, %s444_s9, %s445_s10  }
   0x6   :  { %s446_s11 = smov [#allocation5]  }
   0x7   :  { %s42_s12 = sshll.u32 %s446_s11, 4  ;;  %s43_s12 = int_to_ptr.vmem [resolvable:$true] %s42_s12 }
   0x8   :  { %48 = dma.hbm_to_vmem [thread:$0]  %s41_s8, 1024, %s43_s12, [#allocation6], %s444_s9, %s444_s9, %s445_s10  }
   0x9   :  { %437 = dma.done.wait [#allocation3], 1024  }
   0xa   :  { %438 = vsyncadd [#allocation3], 4294966272 }
   0xb   :  { %439 = dma.done.wait [#allocation6], 1024  }
   0xc   :  { %440 = vsyncadd [#allocation6], 4294966272  ;;  %vm70_vm0 = vcmask 1041408   ;;  %v61_v0 = vld [vmem:[%s513_s1] sm:$0x3]  ;;  %v344_v1 = vld [vmem:[#allocation2 + $0x38] sm:$0xff] }
   0xd   :  { %v72_v2 = vsel %vm70_vm0, %v61_v0, 0  ;;  %v60_v3 = vld [vmem:[%s512_s0] sm:$0xf]  ;;  %vm66_vm1 = vcmask 31744   ;;  %157 = vmatpush.bf16.msra.mxu1 %v344_v1  ;;  %v343_v4 = vld [vmem:[#allocation2 + $0x30] sm:$0xff]  ;;  %v342_v5 = vld [vmem:[#allocation2 + $0x28] sm:$0xff] }
   0xe   :  { %81 = vmatpush.bf16.msra.mxu0 %v72_v2  ;;  %v341_v6 = vld [vmem:[#allocation2 + $0x20] sm:$0xff]  ;;  %v340_v7 = vld [vmem:[#allocation2 + $0x18] sm:$0xff]  ;;  %v339_v8 = vld [vmem:[#allocation2 + $0x10] sm:$0xff]  ;;  %s447_s18 = smov [#allocation7]   ;;  %s261_s22 = sshll.u32 %s519_s7, 4  ;;  %s262_s22 = int_to_ptr.hbm [resolvable:$true] %s261_s22 }
   0xf   :  { %v338_v9 = vld [vmem:[#allocation2 + $0x8] sm:$0xff]  ;;  %v337_v10 = vld [vmem:[#allocation2] sm:$0xff]  ;;  %v352_v11 = vld [vmem:[#allocation5 + $0x38] sm:$0xff]  ;;  %s259_s19 = sshll.u32 %s447_s18, 4  ;;  %s260_s19 = int_to_ptr.vmem [resolvable:$true] %s259_s19 }
  0x10   :  { %240 = vmatpush.bf16.msra.mxu2 %v352_v11  ;;  %v351_v12 = vld [vmem:[#allocation5 + $0x30] sm:$0xff]  ;;  %v350_v13 = vld [vmem:[#allocation5 + $0x28] sm:$0xff]  ;;  %v349_v14 = vld [vmem:[#allocation5 + $0x20] sm:$0xff] }
  0x11   :  { %272 = vmatmul.msk.bf16.vlgmr.msra.gmra.mxu0 %vm66_vm1, %v60_v3  ;;  %158 = vmatpush.bf16.msra.mxu1 %v343_v4  ;;  %v348_v15 = vld [vmem:[#allocation5 + $0x18] sm:$0xff]  ;;  %v358_v16 = vld [vmem:[%s514_s2] ss:$0 sm:$0xff]  ;;  %v347_v22 = vld [vmem:[#allocation5 + $0x10] sm:$0xff] }
  0x12   :  { %v346_v23 = vld [vmem:[#allocation5 + $0x8] sm:$0xff]  ;;  %v345_v24 = vld [vmem:[#allocation5] sm:$0xff] }
  0x13   :  { %v359_v25 = vld [vmem:[%s516_s4] ss:$0 sm:$0xff] }
  0x14   :  { %241 = vmatpush.bf16.msra.mxu2 %v351_v12  ;;  %v360_v31 = vld [vmem:[%s518_s6] ss:$0 sm:$0xff] }
  0x15   :  { %159 = vmatpush.bf16.msra.mxu1 %v342_v5 }
  0x18   :  { %242 = vmatpush.bf16.msra.mxu2 %v350_v13 }
  0x19   :  { %160 = vmatpush.bf16.msra.mxu1 %v341_v6 }
  0x1c   :  { %243 = vmatpush.bf16.msra.mxu2 %v349_v14 }
  0x1d   :  { %161 = vmatpush.bf16.msra.mxu1 %v340_v7 }
  0x20   :  { %244 = vmatpush.bf16.msra.mxu2 %v348_v15 }
  0x21   :  { %162 = vmatpush.bf16.msra.mxu1 %v339_v8 }
  0x24   :  { %245 = vmatpush.bf16.msra.mxu2 %v347_v22 }
  0x25   :  { %163 = vmatpush.bf16.msra.mxu1 %v338_v9 }
  0x28   :  { %246 = vmatpush.bf16.msra.mxu2 %v346_v23 }
  0x29   :  { %164 = vmatpush.bf16.msra.mxu1 %v337_v10 }
  0x2c   :  { %247 = vmatpush.bf16.msra.mxu2 %v345_v24 }
  0x8e   :  { %v83_v17 = vpop.f32.mrf.mxu0 }
  0x8f   :  { %v84_v18 = vadd.f32 %v358_v16, %v83_v17 }
  0x91   :  { %361 = vtanh.f32 %v84_v18 }
  0x96   :  { %v85_v19 = vpop.f32.mrf.mxu0 }
  0x97   :  { %v362_v20 = vpop.eup %361 }
  0x98   :  { %v88_v21 = vpack.c.bf16 %v362_v20, %v362_v20 }
  0x9a   :  { %165 = vmatmul.bf16.vlgmr.msra.gmra.mxu1 %v88_v21 }
 0x117   :  { %v166_v26 = vpop.f32.mrf.mxu1 }
 0x118   :  { %v167_v27 = vadd.f32 %v359_v25, %v166_v26 }
 0x11a   :  { %363 = vtanh.f32 %v167_v27 }
 0x11f   :  { %v168_v28 = vpop.f32.mrf.mxu1 }
 0x120   :  { %v364_v29 = vpop.eup %363 }
 0x121   :  { %v171_v30 = vpack.c.bf16 %v364_v29, %v364_v29 }
 0x123   :  { %248 = vmatmul.bf16.vlgmr.msra.gmra.mxu2 %v171_v30 }
 0x1a6   :  { %v249_v32 = vpop.f32.mrf.mxu2 }
 0x1a7   :  { %v250_v33 = vadd.f32 %v360_v31, %v249_v32 }
 0x1a9   :  { %253 = vst [vmem:[#allocation7] sm:$0xff] %v250_v33 }
 0x1aa   :  { %264 = dma.vmem_to_hbm [thread:$0]  %s260_s19, 128, %s262_s22, [#allocation4]  }
 0x1ae   :  { %v251_v34 = vpop.f32.mrf.mxu2 }
 0x1af   :  { %441 = dma.done.wait [#allocation4], 128  }
 0x1b0   :  { %442 = vsyncadd [#allocation4], 4294967168 }
 0x1b1   :  { %269 = vsyncpa [#allocation3], 1 }
 0x1b2   :  { %270 = vsyncpa [#allocation6], 1 }
 0x1b3   :  { %271 = vsyncpa [#allocation4], 1 }

</bundles_post_ra>
